<compile_context>
chip_gen: v6e
topology: v6e:2x2x1
jax: 0.10.0
libtpu: 0.0.40
codegen_flags: <defaults>
</compile_context>

<pallas_src>
import functools

import jax
import jax.numpy as jnp
import numpy as np
from jax import lax
from jax.experimental import pallas as pl
from jax.experimental.pallas import tpu as pltpu

_BF16_SUBLANES = 16   # bf16 packs 16 rows per (16,128) sublane tile


def _round_up(x, m):
    return (x + m - 1) // m * m


# ---------------------------------------------------------------------------
# Fused kernel: one grid step == one chunk of whole images, features (C, HW2).
# ---------------------------------------------------------------------------
def _dwsosa_fused_kernel(*refs, K, W, dilation, num_res, has_reduce,
                         cin, cmid, slab_c, hw2):
    if has_reduce:
        (masks_ref, x_ref, wred_ref, bred_ref,
         wfold_ref, bres_ref, wcat_ref, bcat_ref,
         o_ref, col_ref, slab_ref) = refs
    else:
        (masks_ref, x_ref,
         wfold_ref, bres_ref, wcat_ref, bcat_ref,
         o_ref, col_ref, slab_ref) = refs

    KK = K * K
    pad = dilation * (K - 1) // 2
    bf16 = jnp.bfloat16

    x = x_ref[0]                         # (slab_c, hw2) f32; rows >= cin are 0
    x_bf = x.astype(bf16)

    # Slab slot 0 <- raw input (first operand of the fused concat_conv matmul).
    slab_ref[0] = x_bf

    # reduce_conv: 1x1 + folded BN + ReLU (Identity when cin == cmid).
    if has_reduce:
        y0 = jnp.dot(wred_ref[...], x_bf, preferred_element_type=jnp.float32)
        feat0 = jnp.maximum(y0 + bred_ref[...], 0.0)          # (cmid, hw2) f32
    else:
        feat0 = x[:cmid].astype(jnp.float32)

    # Static per-tap lane shifts.  jnp.roll convention: out[i] = in[i - shift];
    # we want out[p] = in[p + s] (s = dh*W + dw), so shift = -s (mod hw2).
    taps = []
    for kh in range(K):
        for kw in range(K):
            dh = kh * dilation - pad
            dw = kw * dilation - pad
            s = dh * W + dw
            taps.append((kh * K + kw, (-s) % hw2, dh == 0 and dw == 0))

    def residual_body(r, feat):
        # Depthwise KxK folded into the pointwise 1x1: build the im2col in a
        # reused VMEM scratch (bf16), one tile-aligned store per tap, then one
        # MXU matmul against the precombined (cmid, K*K*cmid) weight.
        for t, amt, is_center in taps:
            if is_center:
                col_ref[t] = feat.astype(bf16)
            else:
                shifted = pltpu.roll(feat, shift=amt, axis=1)   # XLU lane roll
                # masks_ref[t] is f32 (1, hw2): zero out-of-image pixels (also
                # kills cross-image leakage from the packed-batch roll wrap).
                col_ref[t] = (shifted * masks_ref[t]).astype(bf16)
        col = col_ref[...].reshape(KK * cmid, hw2)              # bf16
        y = jnp.dot(wfold_ref[r], col, preferred_element_type=jnp.float32)
        new_feat = jnp.maximum(y + bres_ref[r], 0.0)            # BN bias + ReLU
        fb = new_feat.astype(bf16)
        if cmid < slab_c:
            fb = jnp.concatenate(
                [fb, jnp.zeros((slab_c - cmid, hw2), bf16)], axis=0)
        slab_ref[1 + r] = fb                                    # concat slot
        return new_feat

    lax.fori_loop(0, num_res, residual_body, feat0)

    # concat_conv: ONE matmul against the whole feature slab (padding columns
    # of wcat are zero, so garbage/zero pad rows contribute nothing).
    slab = slab_ref[...].reshape((1 + num_res) * slab_c, hw2)
    acc = jnp.dot(wcat_ref[...], slab, preferred_element_type=jnp.float32)
    out = jnp.maximum(acc + bcat_ref[...], 0.0)
    o_ref[0] = out.astype(o_ref.dtype)


# ---------------------------------------------------------------------------
# Wrapper: operand packing + pallas_call
# ---------------------------------------------------------------------------
def _tap_masks(H, W, K, dilation, images_per_chunk):
    """(K*K, 1, ipc*H*W) f32 validity masks for 'same' padding, per tap,
    tiled for every image in a chunk (9 KiB DMA; cheaper than regenerating
    in-kernel with iota every grid step)."""
    pad = dilation * (K - 1) // 2
    hh = np.arange(H)[:, None]
    ww = np.arange(W)[None, :]
    ms = []
    for kh in range(K):
        for kw in range(K):
            dh = kh * dilation - pad
            dw = kw * dilation - pad
            m = ((hh + dh >= 0) & (hh + dh < H) & (ww + dw >= 0) & (ww + dw < W))
            ms.append(np.tile(m.reshape(-1), images_per_chunk))
    m = np.stack(ms).astype(np.float32)
    return jnp.asarray(m[:, None, :])


def _prepare_operands(params, cin, cmid, cout, K, R, slab_c):
    KK = K * K
    bf16 = jnp.bfloat16
    wc, bcat = params["concat"]                    # wc: (cout, cin + R*cmid)
    # Padded concat weight matching the slab layout (zero cols on padding rows).
    wc_pad = jnp.zeros((cout, (1 + R) * slab_c), jnp.float32)
    wc_pad = wc_pad.at[:, :cin].set(wc[:, :cin])
    wfold, bres = [], []
    for r, (dwk, pw_f, b) in enumerate(params["residuals"]):
        # Wfold[o, t*cmid + c] = pw_f[o, c] * dw[t, c]  (depthwise folded into 1x1)
        wfold.append((pw_f[:, None, :] * dwk[None, :, :]).reshape(cmid, KK * cmid))
        bres.append(b)
        wc_pad = wc_pad.at[:, (1 + r) * slab_c:(1 + r) * slab_c + cmid].set(
            wc[:, cin + r * cmid: cin + (r + 1) * cmid])
    wfold = jnp.stack(wfold).astype(bf16)          # (R, cmid, KK*cmid) bf16
    bres = jnp.stack(bres)                         # (R, cmid, 1) f32
    if params["reduce"] is not None:
        w_red, b_red = params["reduce"]
        w_red_pad = jnp.zeros((cmid, slab_c), jnp.float32).at[:, :cin].set(w_red)
        reduce_ops = (w_red_pad.astype(bf16), b_red)
    else:
        reduce_ops = None
    return wfold, bres, wc_pad.astype(bf16), bcat, reduce_ops


def dwsosa_forward(x_nchw, params, K, dilation, num_chunks=None):
    N, cin, H, W = x_nchw.shape
    HW = H * W
    KK = K * K
    R = len(params["residuals"])
    has_reduce = params["reduce"] is not None
    cmid = params["residuals"][0][1].shape[0]
    cout = params["concat"][0].shape[0]
    if not has_reduce:
        assert cin == cmid, "reduce_conv is Identity only when cin == cmid"

    # Batch lives in the lane dim of every feature map; >1 chunk only to expose
    # TensorCore parallelism on v7x (near-free on single-TC v5e/v6e).
    if num_chunks is None:
        num_chunks = 2 if (N % 2 == 0 and N >= 2) else 1
    assert N % num_chunks == 0
    ipc = N // num_chunks
    hw2 = ipc * HW

    slab_c = max(_round_up(cin, _BF16_SUBLANES), _round_up(cmid, _BF16_SUBLANES))
    masks = _tap_masks(H, W, K, dilation, ipc)
    wfold, bres, wcat, bcat, reduce_ops = _prepare_operands(
        params, cin, cmid, cout, K, R, slab_c)

    # (N, cin, H, W) -> (chunks, slab_c, ipc*HW): batch packed into lanes,
    # channel rows padded with zeros to the bf16 sublane tile (tile-aligned
    # slab stores; padded weight columns are zero).
    xp = x_nchw.reshape(num_chunks, ipc, cin, HW).transpose(0, 2, 1, 3)
    xp = xp.reshape(num_chunks, cin, hw2)
    if cin < slab_c:
        xp = jnp.concatenate(
            [xp, jnp.zeros((num_chunks, slab_c - cin, hw2), xp.dtype)], axis=1)

    operands = [masks, xp]
    in_specs = [
        pl.BlockSpec((KK, 1, hw2), lambda c: (0, 0, 0)),
        pl.BlockSpec((1, slab_c, hw2), lambda c: (c, 0, 0)),
    ]
    if has_reduce:
        operands += list(reduce_ops)
        in_specs += [
            pl.BlockSpec((cmid, slab_c), lambda c: (0, 0)),
            pl.BlockSpec((cmid, 1), lambda c: (0, 0)),
        ]
    operands += [wfold, bres, wcat, bcat]
    in_specs += [
        pl.BlockSpec((R, cmid, KK * cmid), lambda c: (0, 0, 0)),
        pl.BlockSpec((R, cmid, 1), lambda c: (0, 0, 0)),
        pl.BlockSpec((cout, (1 + R) * slab_c), lambda c: (0, 0)),
        pl.BlockSpec((cout, 1), lambda c: (0, 0)),
    ]

    kernel = functools.partial(
        _dwsosa_fused_kernel, K=K, W=W, dilation=dilation, num_res=R,
        has_reduce=has_reduce, cin=cin, cmid=cmid, slab_c=slab_c, hw2=hw2)

    out = pl.pallas_call(
        kernel,
        out_shape=jax.ShapeDtypeStruct((num_chunks, cout, hw2), x_nchw.dtype),
        grid=(num_chunks,),
        in_specs=in_specs,
        out_specs=pl.BlockSpec((1, cout, hw2), lambda c: (c, 0, 0)),
        scratch_shapes=[
            pltpu.VMEM((KK, cmid, hw2), jnp.bfloat16),        # im2col staging
            pltpu.VMEM((1 + R, slab_c, hw2), jnp.bfloat16),   # concat slab
        ],
        compiler_params=pltpu.CompilerParams(
            dimension_semantics=("parallel",)),
    )(*operands)

    out = out.reshape(num_chunks, cout, ipc, H, W).transpose(0, 2, 1, 3, 4)
    return out.reshape(N, cout, H, W)


# ---------------------------------------------------------------------------
# Parameters (deterministic init); BN (eval) folded into conv weight/bias.
# Conv weights kept in PyTorch (out, in) orientation.
# ---------------------------------------------------------------------------
def _fold_bn(w, gamma, beta, mean, var, eps=1e-5):
    scale = gamma / jnp.sqrt(var + eps)
    return w * scale[:, None], (beta - mean * scale)[:, None]   # (O, I), (O, 1)


def _bn_stats(key, c):
    k1, k2, k3, k4 = jax.random.split(key, 4)
    gamma = 1.0 + 0.1 * jax.random.uniform(k1, (c,), jnp.float32)
    beta = 0.1 * jax.random.normal(k2, (c,), jnp.float32)
    mean = 0.1 * jax.random.normal(k3, (c,), jnp.float32)
    var = 1.0 + 0.1 * jax.random.uniform(k4, (c,), jnp.float32)
    return gamma, beta, mean, var


def init_params(key, cin, cmid, cout, K, num_res):
    ks = iter(jax.random.split(key, 3 * num_res + 4))
    p = {}
    if cin != cmid:   # reduce_conv: 1x1 (cin -> cmid) + BN + ReLU
        w = 0.1 * jax.random.normal(next(ks), (cmid, cin), jnp.float32)
        p["reduce"] = _fold_bn(w, *_bn_stats(next(ks), cmid))
    else:
        p["reduce"] = None
    p["residuals"] = []
    for _ in range(num_res):   # depthwise taps (K*K, cmid) + pointwise (cmid, cmid) + BN
        dwk = 0.1 * jax.random.normal(next(ks), (K * K, cmid), jnp.float32)
        pw = 0.1 * jax.random.normal(next(ks), (cmid, cmid), jnp.float32)
        pw_f, b = _fold_bn(pw, *_bn_stats(next(ks), cmid))
        p["residuals"].append((dwk, pw_f, b))
    ctot = cin + cmid * num_res   # concat_conv: 1x1 (ctot -> cout) + BN + ReLU
    w = 0.1 * jax.random.normal(next(ks), (cout, ctot), jnp.float32)
    p["concat"] = _fold_bn(w, *_bn_stats(next(ks), cout))
    return p


# ---------------------------------------------------------------------------
# Pure-JAX reference (NCHW, high precision) for the correctness check.
# ---------------------------------------------------------------------------
def ref_forward(x_nchw, params, K, dilation):
    pad = dilation * (K - 1) // 2

    def pw(x, w, b):
        y = jnp.einsum("oc,nchw->nohw", w, x, precision=lax.Precision.HIGHEST)
        return jnp.maximum(y + b.reshape(1, -1, 1, 1), 0.0)

    def dws(x, dwk, pw_w, b):
        C = x.shape[1]
        rhs = jnp.transpose(dwk.reshape(K, K, C), (2, 0, 1))[:, None, :, :]  # (C,1,K,K)
        y = lax.conv_general_dilated(
            x, rhs, window_strides=(1, 1), padding=[(pad, pad), (pad, pad)],
            rhs_dilation=(dilation, dilation),
            dimension_numbers=("NCHW", "OIHW", "NCHW"),
            feature_group_count=C, precision=lax.Precision.HIGHEST)
        return pw(y, pw_w, b)

    feats = [x_nchw]
    x = x_nchw
    if params["reduce"] is not None:
        x = pw(x, *params["reduce"])
    for dwk, pw_w, b in params["residuals"]:
        x = dws(x, dwk, pw_w, b)
        feats.append(x)
    cat = jnp.concatenate(feats, axis=1)
    return pw(cat, *params["concat"])


if __name__ == "__main__":
    in_channels, internal_channels, out_channels = 8, 16, 16
    kernel_size, num_residuals, dilation = 3, 3, 1
    N, H, W = 2, 16, 16

    key = jax.random.PRNGKey(0)
    kx, kp = jax.random.split(key)

    # PyTorch-style NCHW input; the kernel packs batch into the lane dim.
    x = jax.random.normal(kx, (N, in_channels, H, W), jnp.float32)
    params = init_params(kp, in_channels, internal_channels, out_channels,
                         kernel_size, num_residuals)

    out = jax.block_until_ready(dwsosa_forward(x, params, kernel_size, dilation))
    assert out.shape == (N, out_channels, H, W), out.shape

    ref = jax.block_until_ready(ref_forward(x, params, kernel_size, dilation))
    # bf16 MXU passes (same rounding as default-precision demotion) vs. the
    # HIGHEST-precision f32 reference -> loosened tolerance.
    np.testing.assert_allclose(np.asarray(out), np.asarray(ref), rtol=2e-2, atol=2e-2)

    print("KERNEL_OK")
</pallas_src>

<mosaic_0001>
module attributes {stable_mosaic.version = 11 : i64} {
  func.func @_dwsosa_fused_kernel(%arg0: i32, %arg1: memref<9x1x256xf32, #tpu.memory_space<vmem>>, %arg2: memref<1x16x256xf32, #tpu.memory_space<vmem>>, %arg3: memref<16x16xbf16, #tpu.memory_space<vmem>>, %arg4: memref<16x1xf32, #tpu.memory_space<vmem>>, %arg5: memref<3x16x144xbf16, #tpu.memory_space<vmem>>, %arg6: memref<3x16x1xf32, #tpu.memory_space<vmem>>, %arg7: memref<16x64xbf16, #tpu.memory_space<vmem>>, %arg8: memref<16x1xf32, #tpu.memory_space<vmem>>, %arg9: memref<1x16x256xf32, #tpu.memory_space<vmem>>, %arg10: memref<9x16x256xbf16, #tpu.memory_space<vmem>>, %arg11: memref<4x16x256xbf16, #tpu.memory_space<vmem>>) attributes {dimension_semantics = [#tpu.dimension_semantics<parallel>], iteration_bounds = array<i64: 2>, scalar_prefetch = 0 : i64, scratch_operands = 2 : i64, tpu.core_type = #tpu.core_type<tc>, window_params = [{pipeline_mode = #tpu.pipeline_mode<synchronous>, transform_indices = @transform_0, window_bounds = array<i64: 9, 1, 256>}, {transform_indices = @transform_1, window_bounds = array<i64: 1, 16, 256>}, {pipeline_mode = #tpu.pipeline_mode<synchronous>, transform_indices = @transform_2, window_bounds = array<i64: 16, 16>}, {pipeline_mode = #tpu.pipeline_mode<synchronous>, transform_indices = @transform_3, window_bounds = array<i64: 16, 1>}, {pipeline_mode = #tpu.pipeline_mode<synchronous>, transform_indices = @transform_4, window_bounds = array<i64: 3, 16, 144>}, {pipeline_mode = #tpu.pipeline_mode<synchronous>, transform_indices = @transform_5, window_bounds = array<i64: 3, 16, 1>}, {pipeline_mode = #tpu.pipeline_mode<synchronous>, transform_indices = @transform_6, window_bounds = array<i64: 16, 64>}, {pipeline_mode = #tpu.pipeline_mode<synchronous>, transform_indices = @transform_7, window_bounds = array<i64: 16, 1>}, {transform_indices = @transform_8, window_bounds = array<i64: 1, 16, 256>}]} {
    %c0 = arith.constant 0 : index
    %c0_0 = arith.constant 0 : index
    %c0_1 = arith.constant 0 : index
    %0 = vector.load %arg2[%c0, %c0_0, %c0_1] : memref<1x16x256xf32, #tpu.memory_space<vmem>>, vector<1x16x256xf32>
    %1 = vector.shape_cast %0 : vector<1x16x256xf32> to vector<16x256xf32>
    %2 = arith.truncf %1 : vector<16x256xf32> to vector<16x256xbf16>
    %c0_2 = arith.constant 0 : index
    %c0_3 = arith.constant 0 : index
    %c0_4 = arith.constant 0 : index
    %3 = vector.load %arg11[%c0_2, %c0_3, %c0_4] : memref<4x16x256xbf16, #tpu.memory_space<vmem>>, vector<1x16x256xbf16>
    %4 = vector.shape_cast %3 : vector<1x16x256xbf16> to vector<16x256xbf16>
    %5 = vector.shape_cast %2 : vector<16x256xbf16> to vector<1x16x256xbf16>
    tpu.vector_store %arg11[%c0_2, %c0_3, %c0_4], %5 {strides = array<i32>} : memref<4x16x256xbf16, #tpu.memory_space<vmem>>, vector<1x16x256xbf16>,
    %c0_5 = arith.constant 0 : index
    %c0_6 = arith.constant 0 : index
    %6 = vector.load %arg3[%c0_5, %c0_6] : memref<16x16xbf16, #tpu.memory_space<vmem>>, vector<16x16xbf16>
    %cst = arith.constant dense<0.000000e+00> : vector<16x256xf32>
    %7 = tpu.matmul %6, %2, %cst {dimension_numbers = #tpu.dot_dimension_numbers<[1], [0], [0], [1], [0, 0, 1, 1], [], []>} : vector<16x16xbf16>, vector<16x256xbf16>, vector<16x256xf32> -> vector<16x256xf32>
    %c0_7 = arith.constant 0 : index
    %c0_8 = arith.constant 0 : index
    %8 = vector.load %arg4[%c0_7, %c0_8] : memref<16x1xf32, #tpu.memory_space<vmem>>, vector<16x1xf32>
    %9 = vector.broadcast %8 : vector<16x1xf32> to vector<16x256xf32>
    %10 = arith.addf %7, %9 : vector<16x256xf32>
    %cst_9 = arith.constant 0.000000e+00 : f32
    %11 = vector.broadcast %cst_9 : f32 to vector<16x256xf32>
    %12 = arith.maximumf %10, %11 : vector<16x256xf32>
    %c0_i32 = arith.constant 0 : i32
    %c3_i32 = arith.constant 3 : i32
    %13 = arith.addi %c0_i32, %c3_i32 : i32
    %c1_i32 = arith.constant 1 : i32
    %14 = scf.for %arg12 = %c0_i32 to %13 step %c1_i32 iter_args(%arg13 = %12) -> (vector<16x256xf32>)  : i32 {
      %c17_i32 = arith.constant 17 : i32
      %27 = tpu.dynamic_rotate %arg13 by %c17_i32 dim 1 : vector<16x256xf32>, i32 -> vector<16x256xf32>
      %c0_23 = arith.constant 0 : index
      %c0_24 = arith.constant 0 : index
      %c0_25 = arith.constant 0 : index
      %28 = vector.load %arg1[%c0_23, %c0_24, %c0_25] : memref<9x1x256xf32, #tpu.memory_space<vmem>>, vector<1x1x256xf32>
      %29 = vector.shape_cast %28 : vector<1x1x256xf32> to vector<1x256xf32>
      %30 = vector.broadcast %29 : vector<1x256xf32> to vector<16x256xf32>
      %31 = arith.mulf %27, %30 : vector<16x256xf32>
      %32 = arith.truncf %31 : vector<16x256xf32> to vector<16x256xbf16>
      %c0_26 = arith.constant 0 : index
      %c0_27 = arith.constant 0 : index
      %c0_28 = arith.constant 0 : index
      %33 = vector.load %arg10[%c0_26, %c0_27, %c0_28] : memref<9x16x256xbf16, #tpu.memory_space<vmem>>, vector<1x16x256xbf16>
      %34 = vector.shape_cast %33 : vector<1x16x256xbf16> to vector<16x256xbf16>
      %35 = vector.shape_cast %32 : vector<16x256xbf16> to vector<1x16x256xbf16>
      tpu.vector_store %arg10[%c0_26, %c0_27, %c0_28], %35 {strides = array<i32>} : memref<9x16x256xbf16, #tpu.memory_space<vmem>>, vector<1x16x256xbf16>,
      %c16_i32 = arith.constant 16 : i32
      %36 = tpu.dynamic_rotate %arg13 by %c16_i32 dim 1 : vector<16x256xf32>, i32 -> vector<16x256xf32>
      %c1 = arith.constant 1 : index
      %c0_29 = arith.constant 0 : index
      %c0_30 = arith.constant 0 : index
      %37 = vector.load %arg1[%c1, %c0_29, %c0_30] : memref<9x1x256xf32, #tpu.memory_space<vmem>>, vector<1x1x256xf32>
      %38 = vector.shape_cast %37 : vector<1x1x256xf32> to vector<1x256xf32>
      %39 = vector.broadcast %38 : vector<1x256xf32> to vector<16x256xf32>
      %40 = arith.mulf %36, %39 : vector<16x256xf32>
      %41 = arith.truncf %40 : vector<16x256xf32> to vector<16x256xbf16>
      %c1_31 = arith.constant 1 : index
      %c0_32 = arith.constant 0 : index
      %c0_33 = arith.constant 0 : index
      %42 = vector.load %arg10[%c1_31, %c0_32, %c0_33] : memref<9x16x256xbf16, #tpu.memory_space<vmem>>, vector<1x16x256xbf16>
      %43 = vector.shape_cast %42 : vector<1x16x256xbf16> to vector<16x256xbf16>
      %44 = vector.shape_cast %41 : vector<16x256xbf16> to vector<1x16x256xbf16>
      tpu.vector_store %arg10[%c1_31, %c0_32, %c0_33], %44 {strides = array<i32>} : memref<9x16x256xbf16, #tpu.memory_space<vmem>>, vector<1x16x256xbf16>,
      %c15_i32 = arith.constant 15 : i32
      %45 = tpu.dynamic_rotate %arg13 by %c15_i32 dim 1 : vector<16x256xf32>, i32 -> vector<16x256xf32>
      %c2 = arith.constant 2 : index
      %c0_34 = arith.constant 0 : index
      %c0_35 = arith.constant 0 : index
      %46 = vector.load %arg1[%c2, %c0_34, %c0_35] : memref<9x1x256xf32, #tpu.memory_space<vmem>>, vector<1x1x256xf32>
      %47 = vector.shape_cast %46 : vector<1x1x256xf32> to vector<1x256xf32>
      %48 = vector.broadcast %47 : vector<1x256xf32> to vector<16x256xf32>
      %49 = arith.mulf %45, %48 : vector<16x256xf32>
      %50 = arith.truncf %49 : vector<16x256xf32> to vector<16x256xbf16>
      %c2_36 = arith.constant 2 : index
      %c0_37 = arith.constant 0 : index
      %c0_38 = arith.constant 0 : index
      %51 = vector.load %arg10[%c2_36, %c0_37, %c0_38] : memref<9x16x256xbf16, #tpu.memory_space<vmem>>, vector<1x16x256xbf16>
      %52 = vector.shape_cast %51 : vector<1x16x256xbf16> to vector<16x256xbf16>
      %53 = vector.shape_cast %50 : vector<16x256xbf16> to vector<1x16x256xbf16>
      tpu.vector_store %arg10[%c2_36, %c0_37, %c0_38], %53 {strides = array<i32>} : memref<9x16x256xbf16, #tpu.memory_space<vmem>>, vector<1x16x256xbf16>,
      %c1_i32_39 = arith.constant 1 : i32
      %54 = tpu.dynamic_rotate %arg13 by %c1_i32_39 dim 1 : vector<16x256xf32>, i32 -> vector<16x256xf32>
      %c3 = arith.constant 3 : index
      %c0_40 = arith.constant 0 : index
      %c0_41 = arith.constant 0 : index
      %55 = vector.load %arg1[%c3, %c0_40, %c0_41] : memref<9x1x256xf32, #tpu.memory_space<vmem>>, vector<1x1x256xf32>
      %56 = vector.shape_cast %55 : vector<1x1x256xf32> to vector<1x256xf32>
      %57 = vector.broadcast %56 : vector<1x256xf32> to vector<16x256xf32>
      %58 = arith.mulf %54, %57 : vector<16x256xf32>
      %59 = arith.truncf %58 : vector<16x256xf32> to vector<16x256xbf16>
      %c3_42 = arith.constant 3 : index
      %c0_43 = arith.constant 0 : index
      %c0_44 = arith.constant 0 : index
      %60 = vector.load %arg10[%c3_42, %c0_43, %c0_44] : memref<9x16x256xbf16, #tpu.memory_space<vmem>>, vector<1x16x256xbf16>
      %61 = vector.shape_cast %60 : vector<1x16x256xbf16> to vector<16x256xbf16>
      %62 = vector.shape_cast %59 : vector<16x256xbf16> to vector<1x16x256xbf16>
      tpu.vector_store %arg10[%c3_42, %c0_43, %c0_44], %62 {strides = array<i32>} : memref<9x16x256xbf16, #tpu.memory_space<vmem>>, vector<1x16x256xbf16>,
      %63 = arith.truncf %arg13 : vector<16x256xf32> to vector<16x256xbf16>
      %c4 = arith.constant 4 : index
      %c0_45 = arith.constant 0 : index
      %c0_46 = arith.constant 0 : index
      %64 = vector.load %arg10[%c4, %c0_45, %c0_46] : memref<9x16x256xbf16, #tpu.memory_space<vmem>>, vector<1x16x256xbf16>
      %65 = vector.shape_cast %64 : vector<1x16x256xbf16> to vector<16x256xbf16>
      %66 = vector.shape_cast %63 : vector<16x256xbf16> to vector<1x16x256xbf16>
      tpu.vector_store %arg10[%c4, %c0_45, %c0_46], %66 {strides = array<i32>} : memref<9x16x256xbf16, #tpu.memory_space<vmem>>, vector<1x16x256xbf16>,
      %c255_i32 = arith.constant 255 : i32
      %67 = tpu.dynamic_rotate %arg13 by %c255_i32 dim 1 : vector<16x256xf32>, i32 -> vector<16x256xf32>
      %c5 = arith.constant 5 : index
      %c0_47 = arith.constant 0 : index
      %c0_48 = arith.constant 0 : index
      %68 = vector.load %arg1[%c5, %c0_47, %c0_48] : memref<9x1x256xf32, #tpu.memory_space<vmem>>, vector<1x1x256xf32>
      %69 = vector.shape_cast %68 : vector<1x1x256xf32> to vector<1x256xf32>
      %70 = vector.broadcast %69 : vector<1x256xf32> to vector<16x256xf32>
      %71 = arith.mulf %67, %70 : vector<16x256xf32>
      %72 = arith.truncf %71 : vector<16x256xf32> to vector<16x256xbf16>
      %c5_49 = arith.constant 5 : index
      %c0_50 = arith.constant 0 : index
      %c0_51 = arith.constant 0 : index
      %73 = vector.load %arg10[%c5_49, %c0_50, %c0_51] : memref<9x16x256xbf16, #tpu.memory_space<vmem>>, vector<1x16x256xbf16>
      %74 = vector.shape_cast %73 : vector<1x16x256xbf16> to vector<16x256xbf16>
      %75 = vector.shape_cast %72 : vector<16x256xbf16> to vector<1x16x256xbf16>
      tpu.vector_store %arg10[%c5_49, %c0_50, %c0_51], %75 {strides = array<i32>} : memref<9x16x256xbf16, #tpu.memory_space<vmem>>, vector<1x16x256xbf16>,
      %c241_i32 = arith.constant 241 : i32
      %76 = tpu.dynamic_rotate %arg13 by %c241_i32 dim 1 : vector<16x256xf32>, i32 -> vector<16x256xf32>
      %c6 = arith.constant 6 : index
      %c0_52 = arith.constant 0 : index
      %c0_53 = arith.constant 0 : index
      %77 = vector.load %arg1[%c6, %c0_52, %c0_53] : memref<9x1x256xf32, #tpu.memory_space<vmem>>, vector<1x1x256xf32>
      %78 = vector.shape_cast %77 : vector<1x1x256xf32> to vector<1x256xf32>
      %79 = vector.broadcast %78 : vector<1x256xf32> to vector<16x256xf32>
      %80 = arith.mulf %76, %79 : vector<16x256xf32>
      %81 = arith.truncf %80 : vector<16x256xf32> to vector<16x256xbf16>
      %c6_54 = arith.constant 6 : index
      %c0_55 = arith.constant 0 : index
      %c0_56 = arith.constant 0 : index
      %82 = vector.load %arg10[%c6_54, %c0_55, %c0_56] : memref<9x16x256xbf16, #tpu.memory_space<vmem>>, vector<1x16x256xbf16>
      %83 = vector.shape_cast %82 : vector<1x16x256xbf16> to vector<16x256xbf16>
      %84 = vector.shape_cast %81 : vector<16x256xbf16> to vector<1x16x256xbf16>
      tpu.vector_store %arg10[%c6_54, %c0_55, %c0_56], %84 {strides = array<i32>} : memref<9x16x256xbf16, #tpu.memory_space<vmem>>, vector<1x16x256xbf16>,
      %c240_i32 = arith.constant 240 : i32
      %85 = tpu.dynamic_rotate %arg13 by %c240_i32 dim 1 : vector<16x256xf32>, i32 -> vector<16x256xf32>
      %c7 = arith.constant 7 : index
      %c0_57 = arith.constant 0 : index
      %c0_58 = arith.constant 0 : index
      %86 = vector.load %arg1[%c7, %c0_57, %c0_58] : memref<9x1x256xf32, #tpu.memory_space<vmem>>, vector<1x1x256xf32>
      %87 = vector.shape_cast %86 : vector<1x1x256xf32> to vector<1x256xf32>
      %88 = vector.broadcast %87 : vector<1x256xf32> to vector<16x256xf32>
      %89 = arith.mulf %85, %88 : vector<16x256xf32>
      %90 = arith.truncf %89 : vector<16x256xf32> to vector<16x256xbf16>
      %c7_59 = arith.constant 7 : index
      %c0_60 = arith.constant 0 : index
      %c0_61 = arith.constant 0 : index
      %91 = vector.load %arg10[%c7_59, %c0_60, %c0_61] : memref<9x16x256xbf16, #tpu.memory_space<vmem>>, vector<1x16x256xbf16>
      %92 = vector.shape_cast %91 : vector<1x16x256xbf16> to vector<16x256xbf16>
      %93 = vector.shape_cast %90 : vector<16x256xbf16> to vector<1x16x256xbf16>
      tpu.vector_store %arg10[%c7_59, %c0_60, %c0_61], %93 {strides = array<i32>} : memref<9x16x256xbf16, #tpu.memory_space<vmem>>, vector<1x16x256xbf16>,
      %c239_i32 = arith.constant 239 : i32
      %94 = tpu.dynamic_rotate %arg13 by %c239_i32 dim 1 : vector<16x256xf32>, i32 -> vector<16x256xf32>
      %c8 = arith.constant 8 : index
      %c0_62 = arith.constant 0 : index
      %c0_63 = arith.constant 0 : index
      %95 = vector.load %arg1[%c8, %c0_62, %c0_63] : memref<9x1x256xf32, #tpu.memory_space<vmem>>, vector<1x1x256xf32>
      %96 = vector.shape_cast %95 : vector<1x1x256xf32> to vector<1x256xf32>
      %97 = vector.broadcast %96 : vector<1x256xf32> to vector<16x256xf32>
      %98 = arith.mulf %94, %97 : vector<16x256xf32>
      %99 = arith.truncf %98 : vector<16x256xf32> to vector<16x256xbf16>
      %c8_64 = arith.constant 8 : index
      %c0_65 = arith.constant 0 : index
      %c0_66 = arith.constant 0 : index
      %100 = vector.load %arg10[%c8_64, %c0_65, %c0_66] : memref<9x16x256xbf16, #tpu.memory_space<vmem>>, vector<1x16x256xbf16>
      %101 = vector.shape_cast %100 : vector<1x16x256xbf16> to vector<16x256xbf16>
      %102 = vector.shape_cast %99 : vector<16x256xbf16> to vector<1x16x256xbf16>
      tpu.vector_store %arg10[%c8_64, %c0_65, %c0_66], %102 {strides = array<i32>} : memref<9x16x256xbf16, #tpu.memory_space<vmem>>, vector<1x16x256xbf16>,
      %c0_67 = arith.constant 0 : index
      %c0_68 = arith.constant 0 : index
      %c0_69 = arith.constant 0 : index
      %103 = vector.load %arg10[%c0_67, %c0_68, %c0_69] : memref<9x16x256xbf16, #tpu.memory_space<vmem>>, vector<9x16x256xbf16>
      %104 = vector.shape_cast %103 : vector<9x16x256xbf16> to vector<144x256xbf16>
      %105 = arith.index_cast %arg12 : i32 to index
      %c0_70 = arith.constant 0 : index
      %c0_71 = arith.constant 0 : index
      %106 = vector.load %arg5[%105, %c0_70, %c0_71] : memref<3x16x144xbf16, #tpu.memory_space<vmem>>, vector<1x16x144xbf16>
      %107 = vector.shape_cast %106 : vector<1x16x144xbf16> to vector<16x144xbf16>
      %cst_72 = arith.constant dense<0.000000e+00> : vector<16x256xf32>
      %108 = tpu.matmul %107, %104, %cst_72 {dimension_numbers = #tpu.dot_dimension_numbers<[1], [0], [0], [1], [0, 0, 1, 1], [], []>} : vector<16x144xbf16>, vector<144x256xbf16>, vector<16x256xf32> -> vector<16x256xf32>
      %109 = arith.index_cast %arg12 : i32 to index
      %c0_73 = arith.constant 0 : index
      %c0_74 = arith.constant 0 : index
      %110 = vector.load %arg6[%109, %c0_73, %c0_74] : memref<3x16x1xf32, #tpu.memory_space<vmem>>, vector<1x16x1xf32>
      %111 = vector.shape_cast %110 : vector<1x16x1xf32> to vector<16x1xf32>
      %112 = vector.broadcast %111 : vector<16x1xf32> to vector<16x256xf32>
      %113 = arith.addf %108, %112 : vector<16x256xf32>
      %cst_75 = arith.constant 0.000000e+00 : f32
      %114 = vector.broadcast %cst_75 : f32 to vector<16x256xf32>
      %115 = arith.maximumf %113, %114 : vector<16x256xf32>
      %116 = arith.truncf %115 : vector<16x256xf32> to vector<16x256xbf16>
      %c1_i32_76 = arith.constant 1 : i32
      %117 = arith.addi %c1_i32_76, %arg12 : i32
      %118 = arith.index_cast %117 : i32 to index
      %c0_77 = arith.constant 0 : index
      %c0_78 = arith.constant 0 : index
      %119 = vector.load %arg11[%118, %c0_77, %c0_78] : memref<4x16x256xbf16, #tpu.memory_space<vmem>>, vector<1x16x256xbf16>
      %120 = vector.shape_cast %119 : vector<1x16x256xbf16> to vector<16x256xbf16>
      %121 = vector.shape_cast %116 : vector<16x256xbf16> to vector<1x16x256xbf16>
      tpu.vector_store %arg11[%118, %c0_77, %c0_78], %121 {strides = array<i32>} : memref<4x16x256xbf16, #tpu.memory_space<vmem>>, vector<1x16x256xbf16>,
      scf.yield %115 : vector<16x256xf32>
    }
    %c3_i32_10 = arith.constant 3 : i32
    %c0_11 = arith.constant 0 : index
    %c0_12 = arith.constant 0 : index
    %c0_13 = arith.constant 0 : index
    %15 = vector.load %arg11[%c0_11, %c0_12, %c0_13] : memref<4x16x256xbf16, #tpu.memory_space<vmem>>, vector<4x16x256xbf16>
    %16 = vector.shape_cast %15 : vector<4x16x256xbf16> to vector<64x256xbf16>
    %c0_14 = arith.constant 0 : index
    %c0_15 = arith.constant 0 : index
    %17 = vector.load %arg7[%c0_14, %c0_15] : memref<16x64xbf16, #tpu.memory_space<vmem>>, vector<16x64xbf16>
    %cst_16 = arith.constant dense<0.000000e+00> : vector<16x256xf32>
    %18 = tpu.matmul %17, %16, %cst_16 {dimension_numbers = #tpu.dot_dimension_numbers<[1], [0], [0], [1], [0, 0, 1, 1], [], []>} : vector<16x64xbf16>, vector<64x256xbf16>, vector<16x256xf32> -> vector<16x256xf32>
    %c0_17 = arith.constant 0 : index
    %c0_18 = arith.constant 0 : index
    %19 = vector.load %arg8[%c0_17, %c0_18] : memref<16x1xf32, #tpu.memory_space<vmem>>, vector<16x1xf32>
    %20 = vector.broadcast %19 : vector<16x1xf32> to vector<16x256xf32>
    %21 = arith.addf %18, %20 : vector<16x256xf32>
    %cst_19 = arith.constant 0.000000e+00 : f32
    %22 = vector.broadcast %cst_19 : f32 to vector<16x256xf32>
    %23 = arith.maximumf %21, %22 : vector<16x256xf32>
    %c0_20 = arith.constant 0 : index
    %c0_21 = arith.constant 0 : index
    %c0_22 = arith.constant 0 : index
    %24 = vector.load %arg9[%c0_20, %c0_21, %c0_22] : memref<1x16x256xf32, #tpu.memory_space<vmem>>, vector<1x16x256xf32>
    %25 = vector.shape_cast %24 : vector<1x16x256xf32> to vector<16x256xf32>
    %26 = vector.shape_cast %23 : vector<16x256xf32> to vector<1x16x256xf32>
    tpu.vector_store %arg9[%c0_20, %c0_21, %c0_22], %26 {strides = array<i32>} : memref<1x16x256xf32, #tpu.memory_space<vmem>>, vector<1x16x256xf32>,
    return
  }
  func.func @transform_0(%arg0: i32) -> (i32, i32, i32) {
    %c0_i32 = arith.constant 0 : i32
    %c0_i32_0 = arith.constant 0 : i32
    %c0_i32_1 = arith.constant 0 : i32
    %c0_i32_2 = arith.constant 0 : i32
    return %c0_i32, %c0_i32_0, %c0_i32_1 : i32, i32, i32
  }
  func.func @transform_1(%arg0: i32) -> (i32, i32, i32) {
    %c0_i32 = arith.constant 0 : i32
    %c0_i32_0 = arith.constant 0 : i32
    %c0_i32_1 = arith.constant 0 : i32
    return %arg0, %c0_i32, %c0_i32_0 : i32, i32, i32
  }
  func.func @transform_2(%arg0: i32) -> (i32, i32) {
    %c0_i32 = arith.constant 0 : i32
    %c0_i32_0 = arith.constant 0 : i32
    %c0_i32_1 = arith.constant 0 : i32
    return %c0_i32, %c0_i32_0 : i32, i32
  }
  func.func @transform_3(%arg0: i32) -> (i32, i32) {
    %c0_i32 = arith.constant 0 : i32
    %c0_i32_0 = arith.constant 0 : i32
    %c0_i32_1 = arith.constant 0 : i32
    return %c0_i32, %c0_i32_0 : i32, i32
  }
  func.func @transform_4(%arg0: i32) -> (i32, i32, i32) {
    %c0_i32 = arith.constant 0 : i32
    %c0_i32_0 = arith.constant 0 : i32
    %c0_i32_1 = arith.constant 0 : i32
    %c0_i32_2 = arith.constant 0 : i32
    return %c0_i32, %c0_i32_0, %c0_i32_1 : i32, i32, i32
  }
  func.func @transform_5(%arg0: i32) -> (i32, i32, i32) {
    %c0_i32 = arith.constant 0 : i32
    %c0_i32_0 = arith.constant 0 : i32
    %c0_i32_1 = arith.constant 0 : i32
    %c0_i32_2 = arith.constant 0 : i32
    return %c0_i32, %c0_i32_0, %c0_i32_1 : i32, i32, i32
  }
  func.func @transform_6(%arg0: i32) -> (i32, i32) {
    %c0_i32 = arith.constant 0 : i32
    %c0_i32_0 = arith.constant 0 : i32
    %c0_i32_1 = arith.constant 0 : i32
    return %c0_i32, %c0_i32_0 : i32, i32
  }
  func.func @transform_7(%arg0: i32) -> (i32, i32) {
    %c0_i32 = arith.constant 0 : i32
    %c0_i32_0 = arith.constant 0 : i32
    %c0_i32_1 = arith.constant 0 : i32
    return %c0_i32, %c0_i32_0 : i32, i32
  }
  func.func @transform_8(%arg0: i32) -> (i32, i32, i32) {
    %c0_i32 = arith.constant 0 : i32
    %c0_i32_0 = arith.constant 0 : i32
    %c0_i32_1 = arith.constant 0 : i32
    return %arg0, %c0_i32, %c0_i32_0 : i32, i32, i32
  }
}

</mosaic_0001>

<bundles_post_ra>
// kernel: tpu_custom_call.1
= control target key start
LH: loop header
LB: loop body
LE: loop exit
PB: predicated region body
PF: predicated region fallthrough
CT: control target
= control target key end

     0   :  { %13 = vsyncpa [#allocation5], 0  ;;  %s2069_s0 = inlined_call_operand.vmem [shape: f32[9,1,256], index: 0, kind: input, shape index: {}]   ;;  %s2070_s1 = inlined_call_operand.vmem [shape: f32[2,16,256], index: 1, kind: input, shape index: {}]   ;;  %s2071_s2 = inlined_call_operand.hbm [shape: bf16[16,16], index: 2, kind: input, shape index: {}]   ;;  %s2072_s3 = inlined_call_operand.vmem [shape: f32[16,1], index: 3, kind: input, shape index: {}]   ;;  %s2073_s4 = inlined_call_operand.hbm [shape: bf16[3,16,144], index: 4, kind: input, shape index: {}]   ;;  %s2074_s5 = inlined_call_operand.vmem [shape: f32[3,16,1], index: 5, kind: input, shape index: {}]   ;;  %s2075_s6 = inlined_call_operand.vmem [shape: bf16[16,64], index: 6, kind: input, shape index: {}]   ;;  %s2076_s7 = inlined_call_operand.vmem [shape: f32[16,1], index: 7, kind: input, shape index: {}]   ;;  %s2077_s8 = inlined_call_operand.hbm [shape: f32[2,16,256], index: 8, kind: output, shape index: {}]  }
   0x1   :  { %14 = vsyncpa [#allocation8], 0 }
   0x2   :  { %15 = vsyncpa [#allocation6], 0 }
   0x3   :  { %17 = vsyncpa [#allocation6 + $0x1], 0  ;;  %s1746_s27 = smov 0   ;;  %s1748_s28 = smov 0  }
   0x4   :  { %s1750_s29 = smov 0   ;;  %s1752_s30 = smov 0  }
   0x5 LB: > { %s1767_s9 = sadd.s32 4294967295, %s1660_s30   ;;  %s1256_s10 = sadd.s32 4294967294, %s1660_s30   ;;  %s1660_s30 = sphi %s1752_s30, %s2091_s30   ;;  %s1656_s29 = sphi %s1750_s29, %s2090_s29   ;;  %s1652_s28 = sphi %s1748_s28, %s2089_s28   ;;  %s1648_s27 = sphi %s1746_s27, %s2088_s27  }
   0x6   : > { %s1771_s11 = sadd.s32 1, %s1660_s30   ;;  %s203_s12 = sadd.s32 1, %s1656_s29 }
   0x7   : > { %s200_s13 = ssub.s32 %s1660_s30, %s1771_s11  ;;  %p213_p0 = scmp.ne.s32.totalorder %s1656_s29, %s1652_s28 }
   0x8   : > { %p201_p1 = scmp.eq.s32.totalorder %s200_s13, 0  ;;  %p214_p2 = scmp.eq.s32.totalorder %s1767_s9, 1 }
   0x9   : > { %p219_p3 = scmp.ne.s32.totalorder %s1652_s28, %s1648_s27  ;;  %p220_p4 = scmp.eq.s32.totalorder %s1256_s10, 1 }
   0xa   : > { %s1782_s14 = scalar_select %p201_p1, %s1656_s29, %s203_s12  }
   0xb   : > { %p1784_p5 = por %p214_p2, %p213_p0  ;;  %p1788_p6 = por %p220_p4, %p219_p3 }
   0xc   : > { %p1257_p7 = scmp.ge.s32.totalorder %s1660_s30, 1  ;;  %p227_p8 = scmp.lt.s32.totalorder %s1660_s30, 3 }
   0xd   : > { %s2080_s16 = scalar_select %p1788_p6, 1, 0 }
   0xe   : > { %p2078_p9 = scmp.eq.s32.totalorder %s1767_s9, 0  ;;  %p1795_p10 = pnand %p1257_p7, %p227_p8 }
   0xf   : > { %s1682_s18 = smov [#allocation4]   ;;  %s1683_s21 = smov [#allocation7]  }
  0x10   : > { %s242_s19 = sshll.u32 %s1682_s18, 4  ;;  %p1393_p11 = pneg %p1795_p10  ;;  %s243_s19 = int_to_ptr.vmem [resolvable:$true] %s242_s19 }
  0x11   : > { %s258_s22 = sshll.u32 %s1683_s21, 4  ;;  %s1531_s23 = scalar_lea.vmem %s243_s19, 128  ;;  %s259_s22 = int_to_ptr.vmem [resolvable:$true] %s258_s22 }
  0x12   : > { %p1803_p12 = pnand %p2078_p9, %p1393_p11  ;;  %p1532_p0 = scmp.ne.s32.totalorder %s243_s19, %s1531_s23 }
  0x13   : > { %p1539_p3 = scmp.lt.s32.totalorder %s243_s19, %s243_s19  ;;  %p1540_p4 = scmp.lt.s32.totalorder %s1531_s23, %s1531_s23 }
  0x14   : > { %p1522_p13 = pneg %p1803_p12 }
  0x15   : > { %p1541_p7 = por %p1540_p4, %p1539_p3 }
  0x16   : > { %p1534_p1 = pnand %p1532_p0, %p1522_p13 }
  0x18   : > { %p1535_p2 = pneg %p1534_p1 }
  0x1a   : > { %p1542_p8 = pnand %p1541_p7, %p1535_p2 }
  0x1c   : > { %1545 = shalt.err (!%p1542_p8)
}
  0x1d   : > { %s1684_s24 = smov 64   ;;  %s1685_s25 = smov 4  }
  0x1e   : > { %1396 = dma.hbm_to_vmem [thread:$0]  (!%p1803_p12), %s2071_s2, 128, %s243_s19, [#allocation5], %s1684_s24, %s1684_s24, %s1685_s25  }
  0x1f   : > { %s1557_s12 = scalar_lea.vmem %s259_s22, 768  ;;  %p1565_p9 = scmp.lt.s32.totalorder %s259_s22, %s259_s22 }
  0x20   : > { %p1558_p11 = scmp.ne.s32.totalorder %s259_s22, %s1557_s12  ;;  %p1566_p6 = scmp.lt.s32.totalorder %s1557_s12, %s1557_s12 }
  0x22   : > { %p1560_p0 = pnand %p1558_p11, %p1522_p13  ;;  %p1567_p3 = por %p1566_p6, %p1565_p9 }
  0x24   : > { %p1561_p1 = pneg %p1560_p0 }
  0x26   : > { %p1568_p2 = pnand %p1567_p3, %p1561_p1 }
  0x28   : > { %1571 = shalt.err (!%p1568_p2)
}
  0x29   : > { %s1686_s13 = smov 128   ;;  %s1687_s18 = smov 8  }
  0x2a   : > { %1399 = dma.hbm_to_vmem [thread:$0]  (!%p1803_p12), %s2073_s4, 768, %s259_s22, [#allocation8], %s1686_s13, %s1686_s13, %s1687_s18  }
  0x2b   : > { %291 = sbr.rel (%p1795_p10) target bundleno = 899 (0x383), region = 52  ;;  %p2083_p4 = scmp.eq.s32.totalorder (!%p1795_p10), %s1767_s9, 0 }
  0x30   : > { %1635 = dma.done.wait (%p2083_p4), [#allocation5], 128   ;;  %p2084_p13 = pmov %p2083_p4 }
  0x31   : > { %p2085_p6 = pmov %p2083_p4 }
  0x32   : > { %1637 = vsyncadd (%p2084_p13), [#allocation5], 4294967168 }
  0x33   : > { %1639 = dma.done.wait (%p2085_p6), [#allocation8], 768   ;;  %p2086_p9 = pmov %p2083_p4 }
  0x34   : > { %s326_s19 = sand.u32 1, %s1652_s28   ;;  %p329_p12 = scmp.lt.s32.totalorder %s1767_s9, 1  ;;  %v1688_v0 = vmov 0   ;;  %v355_v9 = vld [vmem:[%s2072_s3] sm:$0xff]  ;;  %v356_v11 = vld [vmem:[%s2072_s3 + $0x8] sm:$0xff]  ;;  %vm372_vm0 = vcmask 130048  }
  0x35   : > { %1641 = vsyncadd (%p2086_p9), [#allocation8], 4294966528  ;;  %s1839_s17 = sshll.u32 %s326_s19, 5  ;;  %408 = vmatprep.mubr.bf16.mxu0 %v1688_v0  ;;  %1499 = vset.pattern.permute.xlu0 %v1688_v0  ;;  %v1500_v10 = vld [vmem:[#allocation4] sm:$0xff]   ;;  %s1865_s23 = smov 0  }
  0x36   : > { %s330_s20 = scalar_select %p329_p12, %s1767_s9, 1  ;;  %359 = vperm.xlu0 %1499, %v355_v9  }
  0x37   : > { %s1855_s21 = scalar_lea.vmem [#allocation9], %s1839_s17 }
  0x38   : > { %s1340_s22 = sshll.u32 %s330_s20, 5 }
  0x39   : > { %s333_s26 = scalar_lea.vmem %s2070_s1, %s1340_s22 }
  0x3a   : > { %v335_v1 = vld [vmem:[%s333_s26] sm:$0xff]  ;;  %v336_v2 = vld [vmem:[%s333_s26 + $0x8] sm:$0xff]  ;;  %v337_v3 = vld [vmem:[%s333_s26 + $0x10] sm:$0xff]  ;;  %364 = vperm.xlu0 %1499, %v356_v11  }
  0x3b   : > { %v338_v4 = vld [vmem:[%s333_s26 + $0x18] sm:$0xff]  ;;  %v1341_v5 = vpack.c.bf16 %v336_v2, %v335_v1  ;;  %v339_v6 = vpack.c.bf16 %v337_v3, %v335_v1 }
  0x3c   : > { %v340_v7 = vpack.c.bf16 %v338_v4, %v336_v2  ;;  %v1342_v8 = vpack.c.bf16 %v338_v4, %v337_v3 }
  0x3d   : > { %351 = vst [vmem:[#allocation3] sm:$0xff] %v1341_v5 }
  0x3e   : > { %352 = vst [vmem:[#allocation3 + $0x8] sm:$0xff] %v1342_v8  ;;  %390 = vmatprep.subr.bf16.mxu0 %v340_v7 }
  0x3f   : > { %391 = vmatpush1.bf16.msra.mxu0 %v339_v6 }
  0x42   : > { %1270 = vmatmul.mubr.msk.bf16.vlgmr.msra.gmra.mxu0 %vm372_vm0, %v1500_v10 }
  0xb1   : > { %v360_v12 = vpop.permute.xlu0 %359 }
  0xb5   : > { %v365_v18 = vpop.permute.xlu0 %364 }
 0x102   : > { %v410_v13 = vpop.f32.mrf.mxu0 }
 0x103   : > { %v411_v14 = vadd.f32 %v410_v13, %v360_v12 }
 0x104   : > { %v412_v15 = vpop.f32.mrf.mxu0 }
 0x105   : > { %v419_v16 = vmax.f32 %v411_v14, 0.0   ;;  %v413_v17 = vadd.f32 %v412_v15, %v360_v12 }
 0x106   : > { %v414_v19 = vpop.f32.mrf.mxu0 }
 0x107   : > { %v420_v20 = vmax.f32 %v413_v17, 0.0   ;;  %v415_v21 = vadd.f32 %v414_v19, %v365_v18 }
 0x108   : > { %v416_v22 = vpop.f32.mrf.mxu0 }
 0x109   : > { %v421_v23 = vmax.f32 %v415_v21, 0.0   ;;  %v417_v24 = vadd.f32 %v416_v22, %v365_v18 }
 0x10b   : > { %v422_v25 = vmax.f32 %v417_v24, 0.0  }
 0x10c LB: >> { %s1689_s17 = smov 112   ;;  %s1690_s20 = smov 113   ;;  %v1374_v26 = vpack.c.bf16 %v1664_v25, %v1672_v20  ;;  %v1373_v27 = vpack.c.bf16 %v1668_v23, %v1676_v16  ;;  %v1697_v29 = vmov 0   ;;  %v441_v32 = vlaneseq  ;;  %v1290_v37 = vld [vmem:[%s2069_s0 + $0xe] sm:$0x3]  ;;  %s1680_s23 = sphi %s1865_s23, %s428_s23   ;;  %v1676_v16 = vphi %v419_v16, %v990_v16   ;;  %v1672_v20 = vphi %v420_v20, %v991_v20   ;;  %v1668_v23 = vphi %v421_v23, %v992_v23   ;;  %v1664_v25 = vphi %v422_v25, %v993_v25  }
 0x10d   : >> { %718 = vrot.lane.b32.xlu0 %v1676_v16, %s1689_s17  ;;  %722 = vrot.lane.b32.xlu1 %v1672_v20, %s1689_s17  ;;  %s1691_s22 = smov 127   ;;  %s1692_s24 = smov 1   ;;  %v1287_v52 = vld [vmem:[%s2069_s0 + $0xc] sm:$0x3]  ;;  %v1284_v6 = vld [vmem:[%s2069_s0 + $0xa] sm:$0x3] }
 0x10e   : >> { %s1693_s25 = smov 15   ;;  %s1694_s26 = smov 16   ;;  %1501 = vset.pattern.permute.xlu0 %v1697_v29  ;;  %1502 = vset.pattern.permute.xlu1 %v1697_v29  ;;  %v451_v33 = vshrl.u32 %v441_v32, 7  ;;  %v1929_v34 = vand.u32 127, %v441_v32  ;;  %v1279_v29 = vld [vmem:[%s2069_s0 + $0x6] sm:$0x3] }
 0x10f   : >> { %s1695_s10 = smov 17   ;;  %s1913_s12 = sshll.u32 %s1680_s23, 4 }
 0x110   : >> { %s828_s13 = scalar_lea.vmem [#allocation7], %s1913_s12  ;;  %s1696_s18 = smov 111   ;;  %v1931_v35 = vsub.s32 0, %v451_v33  ;;  %v1933_v36 = vsub.s32 1, %v451_v33  ;;  %vm726_vm1 = vcmp.lt.s32.totalorder %v1929_v34, 112  ;;  %vm681_vm2 = vcmp.lt.s32.totalorder %v1929_v34, 113 }
 0x111   : >> { %720 = vrot.lane.b32.xlu0 %v1668_v23, %s1689_s17  ;;  %724 = vrot.lane.b32.xlu1 %v1664_v25, %s1689_s17  ;;  %v1505_v28 = vld [vmem:[%s828_s13 + $0x4] ss:$8 sps:$4 sm:$0xff]   ;;  %vm636_vm3 = vcmp.lt.s32.totalorder %v1929_v34, 127  ;;  %vm576_vm4 = vcmp.lt.s32.totalorder %v1929_v34, 1  ;;  %vm531_vm5 = vcmp.lt.s32.totalorder %v1929_v34, 15  ;;  %vm486_vm6 = vcmp.lt.s32.totalorder %v1929_v34, 16 }
 0x112   : >> { %1319 = vmatprep.mubr.msk.bf16.mxu0 %vm372_vm0, %v1505_v28  ;;  %v737_v40 = vrot.slane %v1290_v37, %v1931_v35  ;;  %v741_v41 = vrot.slane %v1290_v37, %v1933_v36  ;;  %v692_v57 = vrot.slane %v1287_v52, %v1931_v35  ;;  %v696_v58 = vrot.slane %v1287_v52, %v1933_v36  ;;  %s428_s23 = sadd.s32 1, %s1680_s23  }
 0x113   : >> { %v647_v11 = vrot.slane %v1284_v6, %v1931_v35  ;;  %v651_v12 = vrot.slane %v1284_v6, %v1933_v36  ;;  %v587_v37 = vrot.slane %v1279_v29, %v1931_v35  ;;  %vm443_vm7 = vcmp.lt.s32.totalorder %v1929_v34, 17  ;;  %p425_p10 = scmp.ge.s32.totalorder %s428_s23, 3  }
 0x114   : >> { %vm771_vm8 = vcmp.lt.s32.totalorder %v1929_v34, 111  ;;  %v1503_v34 = vld [vmem:[%s828_s13] ss:$8 sps:$4 sm:$0xff]   ;;  %vm1079_vm9 = vcmask (%p425_p10), 523264   ;;  %s1148_s17 = sshll.u32 (%p425_p10), %s1855_s21, 4  ;;  %s1698_s13 = smov (%p425_p10), [#allocation9]   ;;  %s2023_s17 = int_to_ptr.vmem [resolvable:$true] %s1148_s17 }
 0x115   : >> { %673 = vrot.lane.b32.xlu0 %v1676_v16, %s1690_s20  ;;  %675 = vrot.lane.b32.xlu1 %v1668_v23, %s1690_s20  ;;  %s1576_s23 = sshll.u32 (%p425_p10), %s1698_s13, 4  ;;  %s1577_s23 = int_to_ptr.vmem [resolvable:$false] %s1576_s23 }
 0x116   : > { %p1579_p0 = scmp.lt.s32.totalorder (%p425_p10), %s2023_s17, %s1577_s23 }
 0x119   : >> { %677 = vrot.lane.b32.xlu0 %v1672_v20, %s1690_s20  ;;  %679 = vrot.lane.b32.xlu1 %v1664_v25, %s1690_s20 }
 0x11d   : >> { %628 = vrot.lane.b32.xlu0 %v1676_v16, %s1691_s22  ;;  %630 = vrot.lane.b32.xlu1 %v1668_v23, %s1691_s22 }
 0x121   : >> { %632 = vrot.lane.b32.xlu0 %v1672_v20, %s1691_s22  ;;  %634 = vrot.lane.b32.xlu1 %v1664_v25, %s1691_s22  ;;  %s832_s22 = scalar_lea.vmem %s2074_s5, %s1913_s12 }
 0x122   : >> { %v833_v30 = vld [vmem:[%s832_s22] sm:$0xff]  ;;  %v834_v31 = vld [vmem:[%s832_s22 + $0x8] sm:$0xff] }
 0x125   : >> { %568 = vrot.lane.b32.xlu0 %v1676_v16, %s1692_s24  ;;  %570 = vrot.lane.b32.xlu1 %v1668_v23, %s1692_s24 }
 0x129   : >> { %572 = vrot.lane.b32.xlu0 %v1672_v20, %s1692_s24  ;;  %574 = vrot.lane.b32.xlu1 %v1664_v25, %s1692_s24  ;;  %s1190_s24 = scalar_lea.vmem [#allocation3], %s1913_s12  ;;  %s1572_s12 = scalar_lea.vmem (%p425_p10), %s2023_s17, 512 }
 0x12a   : > { %p1573_p7 = scmp.ne.s32.totalorder (%p425_p10), %s2023_s17, %s1572_s12 }
 0x12c   : > { %p1574_p8 = pnand (%p425_p10), %p1573_p7, %p1784_p5 }
 0x12d   : >> { %523 = vrot.lane.b32.xlu0 %v1676_v16, %s1693_s25  ;;  %525 = vrot.lane.b32.xlu1 %v1668_v23, %s1693_s25 }
 0x12e   : > { %p1575_p11 = pneg (%p425_p10), %p1574_p8 }
 0x131   : >> { %527 = vrot.lane.b32.xlu0 %v1672_v20, %s1693_s25  ;;  %529 = vrot.lane.b32.xlu1 %v1664_v25, %s1693_s25  ;;  %s1578_s25 = scalar_lea.vmem (%p425_p10), %s1577_s23, 1024 }
 0x132   : > { %p1580_p1 = scmp.lt.s32.totalorder (%p425_p10), %s1578_s25, %s1572_s12 }
 0x134   : > { %p1581_p3 = por (%p425_p10), %p1580_p1, %p1579_p0 }
 0x135   : >> { %478 = vrot.lane.b32.xlu0 %v1676_v16, %s1694_s26  ;;  %480 = vrot.lane.b32.xlu1 %v1668_v23, %s1694_s26 }
 0x136   : > { %p1582_p2 = pnand (%p425_p10), %p1581_p3, %p1575_p11 }
 0x139   : >> { %482 = vrot.lane.b32.xlu0 %v1672_v20, %s1694_s26  ;;  %484 = vrot.lane.b32.xlu1 %v1664_v25, %s1694_s26 }
 0x13d   : >> { %433 = vrot.lane.b32.xlu0 %v1676_v16, %s1695_s10  ;;  %435 = vrot.lane.b32.xlu1 %v1668_v23, %s1695_s10 }
 0x141   : >> { %437 = vrot.lane.b32.xlu0 %v1672_v20, %s1695_s10  ;;  %439 = vrot.lane.b32.xlu1 %v1664_v25, %s1695_s10 }
 0x145   : >> { %763 = vrot.lane.b32.xlu0 %v1676_v16, %s1696_s18  ;;  %765 = vrot.lane.b32.xlu1 %v1668_v23, %s1696_s18 }
 0x149   : >> { %767 = vrot.lane.b32.xlu0 %v1672_v20, %s1696_s18  ;;  %769 = vrot.lane.b32.xlu1 %v1664_v25, %s1696_s18  ;;  %s1364_s18 = sshll.u32 (%p425_p10), %s1767_s9, 9  ;;  %s2029_s9 = scalar_lea.sflag (%p425_p10), [#allocation6], %s326_s19 }
 0x14d   : >> { %837 = vperm.xlu0 %1501, %v833_v30   ;;  %842 = vperm.xlu1 %1502, %v834_v31  }
 0x151   : > { %1506 = vset.pattern.permute.xlu0 (%p425_p10), %v1688_v0 }
 0x17f   : >> { %v719_v38 = vpop.permute.xlu0 %718  ;;  %v723_v39 = vpop.permute.xlu1 %722 }
 0x180   : >> { %v727_v42 = vsel %vm726_vm1, %v719_v38, %v723_v39  ;;  %v729_v43 = vsel %vm726_vm1, %v723_v39, %v719_v38  ;;  %v591_v38 = vrot.slane %v1279_v29, %v1933_v36 }
 0x181   : >> { %v744_v48 = vmul.f32 %v737_v40, %v727_v42  ;;  %v745_v50 = vmul.f32 %v741_v41, %v729_v43 }
 0x183   : >> { %v721_v44 = vpop.permute.xlu0 %720  ;;  %v725_v45 = vpop.permute.xlu1 %724 }
 0x184   : >> { %v728_v46 = vsel %vm726_vm1, %v721_v44, %v725_v45  ;;  %v730_v47 = vsel %vm726_vm1, %v725_v45, %v721_v44 }
 0x185   : >> { %v746_v49 = vmul.f32 %v737_v40, %v728_v46  ;;  %v747_v51 = vmul.f32 %v741_v41, %v730_v47 }
 0x187   : >> { %v674_v53 = vpop.permute.xlu0 %673  ;;  %v676_v54 = vpop.permute.xlu1 %675  ;;  %v1380_v55 = vpack.c.bf16 %v747_v51, %v745_v50  ;;  %v1379_v56 = vpack.c.bf16 %v746_v49, %v744_v48  ;;  %v1276_v49 = vld [vmem:[%s2069_s0 + $0x4] sm:$0x3] }
 0x188   : >> { %v546_v52 = vrot.slane %v1276_v49, %v1933_v36 }
 0x189   : >> { %947 = vmatprep.subr.bf16.mxu0 %v1380_v55 }
 0x18a   : >> { %948 = vmatpush1.bf16.msra.mxu0 %v1379_v56 }
 0x18b   : >> { %v678_v59 = vpop.permute.xlu0 %677  ;;  %v680_v60 = vpop.permute.xlu1 %679 }
 0x18c   : >> { %v682_v61 = vsel %vm681_vm2, %v674_v53, %v678_v59  ;;  %v684_v62 = vsel %vm681_vm2, %v678_v59, %v674_v53  ;;  %v683_v63 = vsel %vm681_vm2, %v676_v54, %v680_v60  ;;  %v685_v1 = vsel %vm681_vm2, %v680_v60, %v676_v54  ;;  %v1273_v60 = vld [vmem:[%s2069_s0 + $0x2] sm:$0x3] }
 0x18d   : >> { %v699_v2 = vmul.f32 %v692_v57, %v682_v61  ;;  %v700_v3 = vmul.f32 %v696_v58, %v684_v62  ;;  %v701_v4 = vmul.f32 %v692_v57, %v683_v63  ;;  %v702_v5 = vmul.f32 %v696_v58, %v685_v1 }
 0x18f   : >> { %v629_v7 = vpop.permute.xlu0 %628  ;;  %v631_v8 = vpop.permute.xlu1 %630  ;;  %v1378_v9 = vpack.c.bf16 %v702_v5, %v700_v3  ;;  %v1377_v10 = vpack.c.bf16 %v701_v4, %v699_v2  ;;  %v497_v2 = vrot.slane %v1273_v60, %v1931_v35  ;;  %v501_v3 = vrot.slane %v1273_v60, %v1933_v36 }
 0x191   : >> { %949 = vmatprep.subr.bf16.mxu0 %v1378_v9 }
 0x192   : >> { %950 = vmatpush1.bf16.msra.mxu0 %v1377_v10 }
 0x193   : >> { %v633_v13 = vpop.permute.xlu0 %632  ;;  %v635_v14 = vpop.permute.xlu1 %634 }
 0x194   : >> { %v637_v15 = vsel %vm636_vm3, %v629_v7, %v633_v13  ;;  %v639_v17 = vsel %vm636_vm3, %v633_v13, %v629_v7  ;;  %v638_v18 = vsel %vm636_vm3, %v631_v8, %v635_v14  ;;  %v640_v19 = vsel %vm636_vm3, %v635_v14, %v631_v8  ;;  %v448_v14 = vld [vmem:[%s2069_s0] sm:$0x3] }
 0x195   : >> { %v654_v21 = vmul.f32 %v647_v11, %v637_v15  ;;  %v655_v22 = vmul.f32 %v651_v12, %v639_v17  ;;  %v656_v24 = vmul.f32 %v647_v11, %v638_v18  ;;  %v657_v28 = vmul.f32 %v651_v12, %v640_v19 }
 0x197   : >> { %v569_v30 = vpop.permute.xlu0 %568  ;;  %v571_v31 = vpop.permute.xlu1 %570  ;;  %v1376_v32 = vpack.c.bf16 %v657_v28, %v655_v22  ;;  %v1375_v33 = vpack.c.bf16 %v656_v24, %v654_v21  ;;  %v453_v21 = vrot.slane %v448_v14, %v1931_v35  ;;  %v457_v22 = vrot.slane %v448_v14, %v1933_v36 }
 0x199   : >> { %951 = vmatprep.subr.bf16.mxu0 %v1376_v32 }
 0x19a   : >> { %952 = vmatpush1.bf16.msra.mxu0 %v1375_v33 }
 0x19b   : >> { %v573_v39 = vpop.permute.xlu0 %572  ;;  %v575_v40 = vpop.permute.xlu1 %574  ;;  %953 = vmatprep.subr.bf16.mxu0 %v1374_v26  ;;  %v542_v26 = vrot.slane %v1276_v49, %v1931_v35 }
 0x19c   : >> { %v577_v41 = vsel %vm576_vm4, %v569_v30, %v573_v39  ;;  %v579_v42 = vsel %vm576_vm4, %v573_v39, %v569_v30  ;;  %v578_v43 = vsel %vm576_vm4, %v571_v31, %v575_v40  ;;  %v580_v44 = vsel %vm576_vm4, %v575_v40, %v571_v31  ;;  %v1293_v40 = vld [vmem:[%s2069_s0 + $0x10] sm:$0x3] }
 0x19d   : >> { %v594_v45 = vmul.f32 %v587_v37, %v579_v42  ;;  %v595_v46 = vmul.f32 %v591_v38, %v577_v41  ;;  %v596_v47 = vmul.f32 %v587_v37, %v580_v44  ;;  %v597_v48 = vmul.f32 %v591_v38, %v578_v43 }
 0x19e   : >> { %954 = vmatpush1.bf16.msra.mxu0 %v1373_v27 }
 0x19f   : >> { %v524_v50 = vpop.permute.xlu0 %523  ;;  %v526_v51 = vpop.permute.xlu1 %525  ;;  %v1372_v20 = vpack.c.bf16 %v597_v48, %v595_v46  ;;  %v1371_v25 = vpack.c.bf16 %v596_v47, %v594_v45  ;;  %v782_v45 = vrot.slane %v1293_v40, %v1931_v35  ;;  %v786_v46 = vrot.slane %v1293_v40, %v1933_v36 }
 0x1a1   : >> { %955 = vmatprep.subr.bf16.mxu0 %v1372_v20 }
 0x1a2   : >> { %956 = vmatpush1.bf16.msra.mxu0 %v1371_v25 }
 0x1a3   : >> { %v528_v53 = vpop.permute.xlu0 %527  ;;  %v530_v54 = vpop.permute.xlu1 %529 }
 0x1a4   : >> { %v532_v16 = vsel %vm531_vm5, %v524_v50, %v528_v53  ;;  %v534_v23 = vsel %vm531_vm5, %v528_v53, %v524_v50  ;;  %v533_v27 = vsel %vm531_vm5, %v526_v51, %v530_v54  ;;  %v535_v55 = vsel %vm531_vm5, %v530_v54, %v526_v51 }
 0x1a5   : >> { %v549_v56 = vmul.f32 %v542_v26, %v534_v23  ;;  %v550_v57 = vmul.f32 %v546_v52, %v532_v16  ;;  %v551_v58 = vmul.f32 %v542_v26, %v535_v55  ;;  %v552_v59 = vmul.f32 %v546_v52, %v533_v27 }
 0x1a7   : >> { %v479_v61 = vpop.permute.xlu0 %478  ;;  %v481_v62 = vpop.permute.xlu1 %480  ;;  %v1370_v63 = vpack.c.bf16 %v552_v59, %v550_v57  ;;  %v1369_v1 = vpack.c.bf16 %v551_v58, %v549_v56 }
 0x1a9   : >> { %957 = vmatprep.subr.bf16.mxu0 %v1370_v63 }
 0x1aa   : >> { %958 = vmatpush1.bf16.msra.mxu0 %v1369_v1 }
 0x1ab   : >> { %v483_v4 = vpop.permute.xlu0 %482  ;;  %v485_v5 = vpop.permute.xlu1 %484 }
 0x1ac   : >> { %v487_v6 = vsel %vm486_vm6, %v479_v61, %v483_v4  ;;  %v489_v7 = vsel %vm486_vm6, %v483_v4, %v479_v61  ;;  %v488_v8 = vsel %vm486_vm6, %v481_v62, %v485_v5  ;;  %v490_v9 = vsel %vm486_vm6, %v485_v5, %v481_v62  ;;  %v1022_v5 = vld [vmem:[%s2076_s7] sm:$0xff] (%p425_p10) }
 0x1ad   : >> { %v504_v10 = vmul.f32 %v497_v2, %v489_v7  ;;  %v505_v11 = vmul.f32 %v501_v3, %v487_v6  ;;  %v506_v12 = vmul.f32 %v497_v2, %v490_v9  ;;  %v507_v13 = vmul.f32 %v501_v3, %v488_v8  ;;  %1026 = vperm.xlu0 (%p425_p10), %1506, %v1022_v5   ;;  %v1519_v9 = vld [vmem:[%s2075_s6] sm:$0xff] (%p425_p10)  }
 0x1af   : >> { %v434_v15 = vpop.permute.xlu0 %433  ;;  %v436_v17 = vpop.permute.xlu1 %435  ;;  %v1368_v18 = vpack.c.bf16 %v507_v13, %v505_v11  ;;  %v1367_v19 = vpack.c.bf16 %v506_v12, %v504_v10 }
 0x1b1   : >> { %959 = vmatprep.subr.bf16.mxu0 %v1368_v18 }
 0x1b2   : >> { %960 = vmatpush1.bf16.msra.mxu0 %v1367_v19 }
 0x1b3   : >> { %v438_v24 = vpop.permute.xlu0 %437  ;;  %v440_v28 = vpop.permute.xlu1 %439 }
 0x1b4   : >> { %v444_v29 = vsel %vm443_vm7, %v434_v15, %v438_v24  ;;  %v446_v30 = vsel %vm443_vm7, %v438_v24, %v434_v15  ;;  %v445_v31 = vsel %vm443_vm7, %v436_v17, %v440_v28  ;;  %v447_v32 = vsel %vm443_vm7, %v440_v28, %v436_v17 }
 0x1b5   : >> { %v460_v33 = vmul.f32 %v453_v21, %v446_v30  ;;  %v461_v37 = vmul.f32 %v457_v22, %v444_v29  ;;  %v462_v38 = vmul.f32 %v453_v21, %v447_v32  ;;  %v463_v39 = vmul.f32 %v457_v22, %v445_v31 }
 0x1b7   : >> { %v764_v41 = vpop.permute.xlu0 %763  ;;  %v766_v42 = vpop.permute.xlu1 %765  ;;  %v1366_v43 = vpack.c.bf16 %v463_v39, %v461_v37  ;;  %v1365_v44 = vpack.c.bf16 %v462_v38, %v460_v33 }
 0x1b9   : >> { %961 = vmatprep.subr.bf16.mxu0 %v1366_v43 }
 0x1ba   : >> { %962 = vmatpush1.bf16.msra.mxu0 %v1365_v44 }
 0x1bb   : >> { %v768_v47 = vpop.permute.xlu0 %767  ;;  %v770_v48 = vpop.permute.xlu1 %769 }
 0x1bc   : >> { %v772_v49 = vsel %vm771_vm8, %v764_v41, %v768_v47  ;;  %v774_v50 = vsel %vm771_vm8, %v768_v47, %v764_v41  ;;  %v773_v51 = vsel %vm771_vm8, %v766_v42, %v770_v48  ;;  %v775_v20 = vsel %vm771_vm8, %v770_v48, %v766_v42 }
 0x1bd   : >> { %v789_v25 = vmul.f32 %v782_v45, %v772_v49  ;;  %v790_v26 = vmul.f32 %v786_v46, %v774_v50  ;;  %v791_v52 = vmul.f32 %v782_v45, %v773_v51  ;;  %v792_v53 = vmul.f32 %v786_v46, %v775_v20 }
 0x1bf   : >> { %v1382_v54 = vpack.c.bf16 %v792_v53, %v790_v26  ;;  %v1381_v16 = vpack.c.bf16 %v791_v52, %v789_v25 }
 0x1c1   : >> { %977 = vmatprep.subr.bf16.mxu0 %v1382_v54 }
 0x1c2   : >> { %978 = vmatpush2.bf16.msra.mxu0 %v1381_v16 }
 0x1c5   : >> { %980 = vmatmul.mubr.bf16.vlgmr.msra.gmra.mxu0 %v1503_v34 }
 0x1c6   : > { %1115 = vmatprep.mubr.bf16.mxu0 (%p425_p10), %v1688_v0  ;;  %v1023_v0 = vld [vmem:[%s2076_s7 + $0x8] sm:$0xff] (%p425_p10) }
 0x1c7   : > { %1031 = vperm.xlu0 (%p425_p10), %1506, %v1023_v0  }
 0x1c8   : >> { %v838_v35 = vpop.permute.xlu0 %837  ;;  %v843_v55 = vpop.permute.xlu1 %842 }
 0x228   : > { %v1027_v10 = vpop.permute.xlu0 (%p425_p10), %1026 }
 0x242   : > { %v1032_v17 = vpop.permute.xlu0 (%p425_p10), %1031 }
 0x285   : >> { %v981_v36 = vpop.f32.mrf.mxu0 }
 0x286   : >> { %v982_v23 = vadd.f32 %v981_v36, %v838_v35 }
 0x287   : >> { %v983_v27 = vpop.f32.mrf.mxu0 }
 0x288   : >> { %v984_v56 = vadd.f32 %v983_v27, %v838_v35  ;;  %v990_v16 = vmax.f32 %v982_v23, 0.0  }
 0x289   : >> { %v985_v57 = vpop.f32.mrf.mxu0 }
 0x28a   : >> { %v991_v20 = vmax.f32 %v984_v56, 0.0   ;;  %v986_v58 = vadd.f32 %v985_v57, %v843_v55 }
 0x28b   : >> { %v987_v59 = vpop.f32.mrf.mxu0 }
 0x28c   : >> { %v1362_v60 = vpack.c.bf16 %v991_v20, %v990_v16  ;;  %v988_v61 = vadd.f32 %v987_v59, %v843_v55  ;;  %v992_v23 = vmax.f32 %v986_v58, 0.0  }
 0x28e   : >> { %1323 = vst [vmem:[%s1190_s24 + $0x10] sm:$0xff] %v1362_v60  ;;  %v993_v25 = vmax.f32 %v988_v61, 0.0   ;;  %427 = sbr.rel (!%p425_p10) target bundleno = 268 (0x10c), region = 121 }
 0x290   : >> { %v1363_v62 = vpack.c.bf16 %v993_v25, %v992_v23 }
 0x292   : >> { %1324 = vst [vmem:[%s1190_s24 + $0x18] sm:$0xff] %v1363_v62  ;;  %s2021_s24 = scalar_lea.hbm (%p425_p10), %s2077_s8, %s1364_s18 }
 0x299   : > { %v1507_v63 = vld [vmem:[#allocation3 + $0x34] ss:$8 sps:$4 sm:$0xff]   ;;  %v1509_v1 = vld [vmem:[#allocation3 + $0x30] ss:$8 sps:$4 sm:$0xff]   ;;  %v1510_v2 = vld [vmem:[#allocation3 + $0x24] ss:$8 sps:$4 sm:$0xff]  }
 0x29a   : > { %1091 = vmatprep.subr.bf16.mxu0 %v1507_v63  ;;  %v1512_v3 = vld [vmem:[#allocation3 + $0x20] ss:$8 sps:$4 sm:$0xff]   ;;  %v1513_v4 = vld [vmem:[#allocation3 + $0x14] ss:$8 sps:$4 sm:$0xff]   ;;  %v1515_v6 = vld [vmem:[#allocation3 + $0x10] ss:$8 sps:$4 sm:$0xff]  }
 0x29b   : > { %1092 = vmatpush1.bf16.msra.mxu0 %v1509_v1  ;;  %v1516_v7 = vld [vmem:[#allocation3 + $0x4] ss:$8 sps:$4 sm:$0xff]   ;;  %v1518_v8 = vld [vmem:[#allocation3] ss:$8 sps:$4 sm:$0xff]  }
 0x29c   : > { %1093 = vmatprep.subr.bf16.mxu0 %v1510_v2 }
 0x29f   : > { %1094 = vmatpush1.bf16.msra.mxu0 %v1512_v3 }
 0x2a0   : > { %1095 = vmatprep.subr.bf16.mxu0 %v1513_v4 }
 0x2a3   : > { %1096 = vmatpush1.bf16.msra.mxu0 %v1515_v6 }
 0x2a4   : > { %1097 = vmatprep.subr.bf16.mxu0 %v1516_v7 }
 0x2a7   : > { %1098 = vmatpush1.bf16.msra.mxu0 %v1518_v8 }
 0x2aa   : > { %1334 = vmatmul.mubr.msk.bf16.vlgmr.msra.gmra.mxu0 %vm1079_vm9, %v1519_v9 }
 0x36a   : > { %v1117_v11 = vpop.f32.mrf.mxu0 }
 0x36b   : > { %v1118_v12 = vadd.f32 %v1117_v11, %v1027_v10 }
 0x36c   : > { %v1119_v13 = vpop.f32.mrf.mxu0 }
 0x36d   : > { %v1126_v14 = vmax.f32 %v1118_v12, 0.0  ;;  %v1120_v15 = vadd.f32 %v1119_v13, %v1027_v10 }
 0x36e   : > { %v1121_v18 = vpop.f32.mrf.mxu0 }
 0x36f   : > { %1130 = vst [vmem:[%s1855_s21] sm:$0xff] %v1126_v14  ;;  %v1127_v19 = vmax.f32 %v1120_v15, 0.0  ;;  %v1122_v21 = vadd.f32 %v1121_v18, %v1032_v17 }
 0x370   : > { %v1123_v22 = vpop.f32.mrf.mxu0 }
 0x371   : > { %1131 = vst [vmem:[%s1855_s21 + $0x8] sm:$0xff] %v1127_v19  ;;  %v1128_v24 = vmax.f32 %v1122_v21, 0.0  ;;  %v1124_v28 = vadd.f32 %v1123_v22, %v1032_v17 }
 0x373   : > { %1132 = vst [vmem:[%s1855_s21 + $0x10] sm:$0xff] %v1128_v24  ;;  %v1129_v29 = vmax.f32 %v1124_v28, 0.0 }
 0x375   : > { %1133 = vst [vmem:[%s1855_s21 + $0x18] sm:$0xff] %v1129_v29 }
 0x376   : > { %1585 = shalt.err (!%p1582_p2)
}
 0x377   : > { %s1586_s19 = scalar_lea.hbm %s2021_s24, 512  ;;  %s1590_s10 = scalar_lea.hbm %s2077_s8, 1024 }
 0x378   : > { %p1587_p4 = scmp.ne.s32.totalorder %s2021_s24, %s1586_s19  ;;  %p1591_p9 = scmp.lt.s32.totalorder %s2021_s24, %s2077_s8 }
 0x379   : > { %p1592_p12 = scmp.lt.s32.totalorder %s1590_s10, %s1586_s19 }
 0x37a   : > { %p1588_p13 = pnand %p1587_p4, %p1784_p5 }
 0x37b   : > { %p1593_p10 = por %p1592_p12, %p1591_p9 }
 0x37c   : > { %p1589_p6 = pneg %p1588_p13 }
 0x37e   : > { %p1594_p7 = pnand %p1593_p10, %p1589_p6 }
 0x380   : > { %1597 = shalt.err (!%p1594_p7)
}
 0x381   : > { %s1699_s22 = smov 256   ;;  %s1700_s12 = smov 16  }
 0x382   : > { %1391 = dma.vmem_to_hbm [thread:$0]  (%p1784_p5), %s2023_s17, 512, %s2021_s24, %s2029_s9, %s1699_s22, %s1699_s22, %s1700_s12  }
 0x383 PF: > { %p1408_p8 = scmp.ge.s32.totalorder %s1660_s30, 2  ;;  %s1163_s13 = sand.u32 1, %s1648_s27  }
 0x384   : > { %p2087_p11 = scmp.ne.s32.totalorder %s2080_s16, 0  ;;  %s1164_s23 = scalar_lea.sflag [#allocation6], %s1163_s13 }
 0x386   : > { %p1401_p0 = pnand %p1408_p8, %p2087_p11 }
 0x388   : > { %p1402_p1 = pneg %p1401_p0 }
 0x38a   : > { %1643 = dma.done.wait (%p1402_p1), %s1164_s23, 512  }
 0x38b   : > { %1645 = vsyncadd (%p1402_p1), %s1164_s23, 4294966784  ;;  %p20_p3 = scmp.ge.s32.totalorder %s1771_s11, 4   ;;  %s2088_s27 = smov %s1652_s28 }
 0x38c   : > { %s2089_s28 = smov %s1656_s29  ;;  %s2090_s29 = smov %s1782_s14 }
 0x38d   : > { %s2091_s30 = smov %s1771_s11  ;;  %22 = sbr.rel (!%p20_p3) target bundleno = 5 (0x5), region = 132 }
 0x392   :  { %1169 = vsyncpa [#allocation5], 1 }
 0x393   :  { %1171 = vsyncpa [#allocation5 + $0x1], 1 }
 0x394   :  { %1172 = vsyncpa [#allocation8], 1 }
 0x395   :  { %1173 = vsyncpa [#allocation6], 1 }
 0x396   :  { %1175 = vsyncpa [#allocation6 + $0x1], 1 }

</bundles_post_ra>
